<compile_context>
chip_gen: v7x
topology: tpu7x:2x2x1
jax: 0.10.0
libtpu: 0.0.40
codegen_flags: <defaults>
</compile_context>

<pallas_src>
import jax
import jax.numpy as jnp
from jax.experimental import pallas as pl
from jax.experimental.pallas import tpu as pltpu  # noqa: F401  (TPU backend)


def _cat_replicate_kernel(a1_ref, a2_ref, o_ref):
    # a1_ref: (N, C1, H*W), a2_ref: (N, C2, H*W)
    # o_ref : (N, 2*(C1+C2), H*W)
    c1 = a1_ref.shape[1]
    c2 = a2_ref.shape[1]
    cg = c1 + c2
    a1 = a1_ref[...]
    a2 = a2_ref[...]
    # Replica 0
    o_ref[:, 0:c1, :] = a1
    o_ref[:, c1:cg, :] = a2
    # Replica 1 (reuse the already-loaded vregs; no second HBM read)
    o_ref[:, cg:cg + c1, :] = a1
    o_ref[:, cg + c1:, :] = a2


def model_forward(a1, a2):
    """Equivalent of Model.forward: cat([cat([a1,a2],1), cat([a1,a2],1)[..., :W]], 1)."""
    n, c1, h, w = a1.shape
    n2, c2, h2, w2 = a2.shape
    assert (n, h, w) == (n2, h2, w2), (
        "torch.cat(dim=1) requires matching N, H, W: "
        f"got {a1.shape} vs {a2.shape}")
    assert a1.dtype == a2.dtype, (
        f"torch.cat requires matching dtypes: got {a1.dtype} vs {a2.dtype}")

    hw = h * w
    cg = c1 + c2  # channels per replica group

    # Collapse spatial dims into the trailing (lane) dim for wider stores.
    a1_f = a1.reshape(n, c1, hw)
    a2_f = a2.reshape(n, c2, hw)

    out_flat = pl.pallas_call(
        _cat_replicate_kernel,
        out_shape=jax.ShapeDtypeStruct((n, 2 * cg, hw), a1.dtype),
        # No grid: a single invocation writes both replica slabs; full-array
        # blocks (last two dims equal the array dims -> (8,128) rule is
        # trivially satisfied).
        in_specs=[
            pl.BlockSpec((n, c1, hw), lambda: (0, 0, 0)),
            pl.BlockSpec((n, c2, hw), lambda: (0, 0, 0)),
        ],
        out_specs=pl.BlockSpec((n, 2 * cg, hw), lambda: (0, 0, 0)),
    )(a1_f, a2_f)

    # Pure reshape back to NCHW (no data movement).
    return out_flat.reshape(n, 2 * cg, h, w)


if __name__ == "__main__":
    key = jax.random.PRNGKey(0)
    k1, k2 = jax.random.split(key)

    # Small shapes consistent with the module (C=3, W=10); H must match for
    # the dim=1 concat (the original 60-vs-50 H values would not cat).
    a1 = jax.random.normal(k1, (2, 3, 16, 10), dtype=jnp.float32)
    a2 = jax.random.normal(k2, (2, 3, 16, 10), dtype=jnp.float32)

    out = model_forward(a1, a2)
    out = jax.block_until_ready(out)

    # Reference check in plain JAX (mirrors the PyTorch graph).
    v1 = jnp.concatenate([a1, a2], axis=1)
    v2 = v1[:, :, :, 0:9223372036854775807]   # no-op slice
    v3 = v2[:, :, :, 0:10]                    # no-op slice (W == 10)
    ref = jnp.concatenate([v1, v3], axis=1)

    assert out.shape == ref.shape, (out.shape, ref.shape)
    assert jnp.array_equal(out, ref), "mismatch vs reference"
    print("KERNEL_OK")
</pallas_src>

<mosaic_0001>
module attributes {stable_mosaic.version = 11 : i64} {
  func.func @_cat_replicate_kernel(%arg0: memref<2x3x160xf32, #tpu.memory_space<vmem>>, %arg1: memref<2x3x160xf32, #tpu.memory_space<vmem>>, %arg2: memref<2x12x160xf32, #tpu.memory_space<vmem>>) attributes {dimension_semantics = [], scalar_prefetch = 0 : i64, scratch_operands = 0 : i64, tpu.core_type = #tpu.core_type<tc>} {
    %c0 = arith.constant 0 : index
    %c0_0 = arith.constant 0 : index
    %c0_1 = arith.constant 0 : index
    %0 = vector.load %arg0[%c0, %c0_0, %c0_1] : memref<2x3x160xf32, #tpu.memory_space<vmem>>, vector<2x3x160xf32>
    %c0_2 = arith.constant 0 : index
    %c0_3 = arith.constant 0 : index
    %c0_4 = arith.constant 0 : index
    %1 = vector.load %arg1[%c0_2, %c0_3, %c0_4] : memref<2x3x160xf32, #tpu.memory_space<vmem>>, vector<2x3x160xf32>
    %c0_5 = arith.constant 0 : index
    %c0_6 = arith.constant 0 : index
    %c0_7 = arith.constant 0 : index
    %2 = vector.load %arg2[%c0_5, %c0_6, %c0_7] : memref<2x12x160xf32, #tpu.memory_space<vmem>>, vector<2x3x160xf32>
    tpu.vector_store %arg2[%c0_5, %c0_6, %c0_7], %0 {strides = array<i32>} : memref<2x12x160xf32, #tpu.memory_space<vmem>>, vector<2x3x160xf32>,
    %c0_8 = arith.constant 0 : index
    %c3 = arith.constant 3 : index
    %c0_9 = arith.constant 0 : index
    %3 = vector.load %arg2[%c0_8, %c3, %c0_9] : memref<2x12x160xf32, #tpu.memory_space<vmem>>, vector<2x3x160xf32>
    tpu.vector_store %arg2[%c0_8, %c3, %c0_9], %1 {strides = array<i32>} : memref<2x12x160xf32, #tpu.memory_space<vmem>>, vector<2x3x160xf32>,
    %c0_10 = arith.constant 0 : index
    %c6 = arith.constant 6 : index
    %c0_11 = arith.constant 0 : index
    %4 = vector.load %arg2[%c0_10, %c6, %c0_11] : memref<2x12x160xf32, #tpu.memory_space<vmem>>, vector<2x3x160xf32>
    tpu.vector_store %arg2[%c0_10, %c6, %c0_11], %0 {strides = array<i32>} : memref<2x12x160xf32, #tpu.memory_space<vmem>>, vector<2x3x160xf32>,
    %c0_12 = arith.constant 0 : index
    %c9 = arith.constant 9 : index
    %c0_13 = arith.constant 0 : index
    %5 = vector.load %arg2[%c0_12, %c9, %c0_13] : memref<2x12x160xf32, #tpu.memory_space<vmem>>, vector<2x3x160xf32>
    tpu.vector_store %arg2[%c0_12, %c9, %c0_13], %1 {strides = array<i32>} : memref<2x12x160xf32, #tpu.memory_space<vmem>>, vector<2x3x160xf32>,
    return
  }
}

</mosaic_0001>

<bundles_post_ra>
// kernel: tpu_custom_call.1
= control target key start
LH: loop header
LB: loop body
LE: loop exit
PB: predicated region body
PF: predicated region fallthrough
CT: control target
= control target key end

     0   :  { %vm22_vm0 = vcmask 256000   ;;  %vm39_vm1 = vcmask 259075   ;;  %vm52_vm2 = vcmask 261126   ;;  %vm55_vm3 = vcmask 253952   ;;  %s171_s0 = inlined_call_operand.vmem [shape: f32[2,3,160], index: 0, kind: input, shape index: {}]   ;;  %s172_s2 = inlined_call_operand.vmem [shape: f32[2,12,160], index: 2, kind: output, shape index: {}]   ;;  %s173_s1 = inlined_call_operand.vmem [shape: f32[2,3,160], index: 1, kind: input, shape index: {}]  }
   0x1   :  { %v11_v0 = vld [vmem:[%s171_s0] sm:$0x77]  ;;  %v12_v1 = vld [vmem:[%s171_s0 + $0x8] sm:$0x77]  ;;  %vm70_vm4 = vcmask 257025  }
   0x2   :  { %v13_v2 = vld [vmem:[%s173_s1] sm:$0x77]  ;;  %21 = vst [vmem:[%s172_s2] sm:$0x7] %v11_v0  ;;  %v17_v3 = vcombine.high %v11_v0, %v11_v0  ;;  %24 = vst [vmem:[%s172_s2 + $0x20] sm:$0x7] %v12_v1  ;;  %v18_v4 = vcombine.high %v12_v1, %v12_v1  ;;  %v43_v10 = vrot.slane %v11_v0, 2 }
   0x3   :  { %v30_v5 = vrot.slane %v13_v2, 5  ;;  %v28_v6 = vcombine.high %v13_v2, %v13_v2  ;;  %v14_v7 = vld [vmem:[%s173_s1 + $0x8] sm:$0x77]  ;;  %v45_v11 = vrot.slane %v12_v1, 2  ;;  %v61_v15 = vrot.slane %v13_v2, 7 }
   0x4   :  { %v32_v8 = vrot.slane %v14_v7, 5  ;;  %v29_v9 = vcombine.high %v14_v7, %v14_v7  ;;  %23 = vst.msk [vmem:[%s172_s2 + $0x8] sm:$0x7] %vm22_vm0, %v17_v3  ;;  %25 = vst.msk [vmem:[%s172_s2 + $0x28] sm:$0x7] %vm22_vm0, %v18_v4  ;;  %v44_v13 = vrot.slane %v17_v3, 2 }
   0x5   :  { %38 = vst [vmem:[%s172_s2] sm:$0x38] %v30_v5  ;;  %v31_v12 = vrot.slane %v28_v6, 5  ;;  %v46_v14 = vrot.slane %v18_v4, 2  ;;  %51 = vst [vmem:[%s172_s2 + $0x10] ss:$-12 sps:$4 sm:$0xc1] %v43_v10  }
   0x6   :  { %41 = vst [vmem:[%s172_s2 + $0x20] sm:$0x38] %v32_v8  ;;  %v33_v16 = vrot.slane %v29_v9, 5  ;;  %57 = vst [vmem:[%s172_s2 + $0x30] ss:$-12 sps:$4 sm:$0xc1] %v45_v11  }
   0x7   :  { %v62_v17 = vrot.slane %v28_v6, 7  ;;  %v63_v18 = vrot.slane %v14_v7, 7  ;;  %40 = vst.msk [vmem:[%s172_s2 + $0x8] sm:$0x38] %vm39_vm1, %v31_v12  ;;  %69 = vst [vmem:[%s172_s2 + $0x10] sm:$0xe] %v61_v15 }
   0x8   :  { %53 = vst.msk [vmem:[%s172_s2 + $0x8] sm:$0xc0] %vm52_vm2, %v44_v13  ;;  %58 = vst.msk [vmem:[%s172_s2 + $0x28] sm:$0xc0] %vm52_vm2, %v46_v14  ;;  %v64_v19 = vrot.slane %v29_v9, 7 }
   0x9   :  { %56 = vst.msk [vmem:[%s172_s2 + $0x18] sm:$0x1] %vm55_vm3, %v44_v13  ;;  %60 = vst.msk [vmem:[%s172_s2 + $0x38] sm:$0x1] %vm55_vm3, %v46_v14 }
   0xa   :  { %42 = vst.msk [vmem:[%s172_s2 + $0x28] sm:$0x38] %vm39_vm1, %v33_v16  ;;  %72 = vst [vmem:[%s172_s2 + $0x30] sm:$0xe] %v63_v18 }
   0xb   :  { %71 = vst.msk [vmem:[%s172_s2 + $0x18] sm:$0xe] %vm70_vm4, %v62_v17  ;;  %73 = vst.msk [vmem:[%s172_s2 + $0x38] sm:$0xe] %vm70_vm4, %v64_v19 }

</bundles_post_ra>
